<compile_context>
chip_gen: v7x
topology: tpu7x:2x2x1
jax: 0.10.0
libtpu: 0.0.40
codegen_flags: <defaults>
</compile_context>

<pallas_src>
import jax
import jax.numpy as jnp
from jax.experimental import pallas as pl
from jax.experimental.pallas import tpu as pltpu

INPUT_SIZE = 1
HIDDEN_SIZE = 32
OUTPUT_SIZE = 1


def simple_rnn_kernel(x_ref, p_ref, out_ref):
    # x_ref:   (B, S)    input, batch-first, trailing I==1 squeezed away
    # p_ref:   (H+4, H)  packed parameters:
    #                      rows 0..H-1 : W_hh^T
    #                      row  H      : W_ih[:, 0]   (input->hidden, I==1)
    #                      row  H+1    : b_ih + b_hh
    #                      row  H+2    : W_fc[0, :]   (fc weight, O==1)
    #                      row  H+3    : b_fc at column 0
    # out_ref: (B, O)
    B, S = x_ref.shape
    H = p_ref.shape[1]

    # W_hh^T cast to bf16 once (hoisted) -> guaranteed single-pass MXU matmul.
    w_hh_b16 = p_ref[0:H, :].astype(jnp.bfloat16)   # (H, H)
    w_ih_row = p_ref[H:H + 1, :]                    # (1, H)
    bias_row = p_ref[H + 1:H + 2, :]                # (1, H)
    w_fc_row = p_ref[H + 2:H + 3, :]                # (1, H)
    b_fc = p_ref[H + 3:H + 4, 0:1]                  # (1, 1)

    x_all = x_ref[...]                              # (B, S), one vreg

    # Hoisted, time-parallel input projection kept entirely in vregs
    # (no VMEM scratch): xw[t][b, h] = x[b, t] * W_ih[h, 0] + (b_ih + b_hh)[h].
    # None of this sits on the serial h dependency chain.
    xw = [x_all[:, t:t + 1] * w_ih_row + bias_row for t in range(S)]  # S x (B, H)

    # Serial recurrence: per step only  h_bf16 @ W_hh^T_bf16 (f32 acc) + xw_t,
    # then f32 tanh on the EUP.  h stays in vregs the whole time.
    h = jnp.zeros((B, H), jnp.float32)
    for t in range(S):  # S is small & static -> full unroll is intentional
        pre = xw[t] + jnp.dot(h.astype(jnp.bfloat16), w_hh_b16,
                              preferred_element_type=jnp.float32)
        h = jnp.tanh(pre)

    # fc on the last hidden state (== out[:, -1, :] of the RNN):
    #   out[b, 0] = sum_h h[b, h] * W_fc[0, h] + b_fc
    out = jnp.sum(h * w_fc_row, axis=1, keepdims=True) + b_fc
    out_ref[...] = out.astype(out_ref.dtype)


def simple_rnn_forward(x, params):
    """x: (B, S, I) batch-first float32, matching the PyTorch module."""
    w_ih, w_hh, b_ih, b_hh, w_fc, b_fc = params
    B, S, I = x.shape
    H = w_ih.shape[0]
    O = w_fc.shape[0]
    assert I == 1 and O == 1

    # No transpose of x: just drop the trailing I == 1 dim (metadata-only).
    x_2d = x.reshape(B, S)

    # Pack all parameters into one slab -> a single small DMA.
    slab = jnp.concatenate([
        w_hh.T,                                                # (H, H)
        w_ih[:, 0][None, :],                                   # (1, H)
        (b_ih + b_hh)[None, :],                                # (1, H)
        w_fc[0][None, :],                                      # (1, H)
        jnp.zeros((1, H), jnp.float32).at[0, 0].set(b_fc[0]),  # (1, H)
    ], axis=0)                                                 # (H+4, H)

    vmem = pl.BlockSpec(memory_space=pltpu.MemorySpace.VMEM)

    return pl.pallas_call(
        simple_rnn_kernel,
        out_shape=jax.ShapeDtypeStruct((B, O), jnp.float32),
        in_specs=[vmem, vmem],
        out_specs=vmem,
    )(x_2d, slab)


def reference_forward(x, params):
    """Pure-JAX reference mirroring the PyTorch forward exactly."""
    w_ih, w_hh, b_ih, b_hh, w_fc, b_fc = params
    B = x.shape[0]
    h = jnp.zeros((B, w_ih.shape[0]), jnp.float32)
    for t in range(x.shape[1]):
        h = jnp.tanh(x[:, t, :] @ w_ih.T + b_ih + h @ w_hh.T + b_hh)
    return h @ w_fc.T + b_fc


def init_params(key, input_size, hidden_size, output_size):
    # Deterministic init mimicking PyTorch's U(-1/sqrt(H), 1/sqrt(H)) scheme.
    ks = jax.random.split(key, 6)
    k_rnn = 1.0 / jnp.sqrt(hidden_size)
    k_fc = 1.0 / jnp.sqrt(hidden_size)
    w_ih = jax.random.uniform(ks[0], (hidden_size, input_size), jnp.float32, -k_rnn, k_rnn)
    w_hh = jax.random.uniform(ks[1], (hidden_size, hidden_size), jnp.float32, -k_rnn, k_rnn)
    b_ih = jax.random.uniform(ks[2], (hidden_size,), jnp.float32, -k_rnn, k_rnn)
    b_hh = jax.random.uniform(ks[3], (hidden_size,), jnp.float32, -k_rnn, k_rnn)
    w_fc = jax.random.uniform(ks[4], (output_size, hidden_size), jnp.float32, -k_fc, k_fc)
    b_fc = jax.random.uniform(ks[5], (output_size,), jnp.float32, -k_fc, k_fc)
    return (w_ih, w_hh, b_ih, b_hh, w_fc, b_fc)


if __name__ == "__main__":
    key = jax.random.PRNGKey(0)
    k_x, k_p = jax.random.split(key)

    batch, seq = 2, 8
    x = jax.random.normal(k_x, (batch, seq, INPUT_SIZE), jnp.float32)
    params = init_params(k_p, INPUT_SIZE, HIDDEN_SIZE, OUTPUT_SIZE)

    out = simple_rnn_forward(x, params)
    out = jax.block_until_ready(out)

    ref = reference_forward(x, params)
    assert out.shape == (batch, OUTPUT_SIZE), out.shape
    # Tolerance is loosened slightly vs. pure f32 because the recurrent matmul
    # runs as a single bf16 MXU pass (f32 accumulation); tanh keeps the error
    # contracted, so the deviation stays well under this bound.
    assert jnp.allclose(out, ref, atol=1e-2, rtol=1e-2), (out, ref)

    print("KERNEL_OK")
</pallas_src>

<mosaic_0001>
module attributes {stable_mosaic.version = 11 : i64} {
  func.func @simple_rnn_kernel(%arg0: memref<2x8xf32, #tpu.memory_space<vmem>>, %arg1: memref<36x32xf32, #tpu.memory_space<vmem>>, %arg2: memref<2x1xf32, #tpu.memory_space<vmem>>) attributes {dimension_semantics = [], scalar_prefetch = 0 : i64, scratch_operands = 0 : i64, tpu.core_type = #tpu.core_type<tc>} {
    %c0 = arith.constant 0 : index
    %c0_0 = arith.constant 0 : index
    %0 = vector.load %arg1[%c0, %c0_0] : memref<36x32xf32, #tpu.memory_space<vmem>>, vector<32x32xf32>
    %1 = arith.truncf %0 : vector<32x32xf32> to vector<32x32xbf16>
    %c32 = arith.constant 32 : index
    %c0_1 = arith.constant 0 : index
    %2 = vector.load %arg1[%c32, %c0_1] : memref<36x32xf32, #tpu.memory_space<vmem>>, vector<1x32xf32>
    %c33 = arith.constant 33 : index
    %c0_2 = arith.constant 0 : index
    %3 = vector.load %arg1[%c33, %c0_2] : memref<36x32xf32, #tpu.memory_space<vmem>>, vector<1x32xf32>
    %c34 = arith.constant 34 : index
    %c0_3 = arith.constant 0 : index
    %4 = vector.load %arg1[%c34, %c0_3] : memref<36x32xf32, #tpu.memory_space<vmem>>, vector<1x32xf32>
    %c35 = arith.constant 35 : index
    %c0_4 = arith.constant 0 : index
    %5 = vector.load %arg1[%c35, %c0_4] : memref<36x32xf32, #tpu.memory_space<vmem>>, vector<1x1xf32>
    %c0_5 = arith.constant 0 : index
    %c0_6 = arith.constant 0 : index
    %6 = vector.load %arg0[%c0_5, %c0_6] : memref<2x8xf32, #tpu.memory_space<vmem>>, vector<2x8xf32>
    %7 = vector.extract_strided_slice %6 {offsets = [0, 0], sizes = [2, 1], strides = [1, 1]} : vector<2x8xf32> to vector<2x1xf32>
    %8 = vector.broadcast %7 : vector<2x1xf32> to vector<2x32xf32>
    %9 = vector.broadcast %2 : vector<1x32xf32> to vector<2x32xf32>
    %10 = arith.mulf %8, %9 : vector<2x32xf32>
    %11 = vector.broadcast %3 : vector<1x32xf32> to vector<2x32xf32>
    %12 = arith.addf %10, %11 : vector<2x32xf32>
    %13 = vector.extract_strided_slice %6 {offsets = [0, 1], sizes = [2, 1], strides = [1, 1]} : vector<2x8xf32> to vector<2x1xf32>
    %14 = vector.broadcast %13 : vector<2x1xf32> to vector<2x32xf32>
    %15 = vector.broadcast %2 : vector<1x32xf32> to vector<2x32xf32>
    %16 = arith.mulf %14, %15 : vector<2x32xf32>
    %17 = vector.broadcast %3 : vector<1x32xf32> to vector<2x32xf32>
    %18 = arith.addf %16, %17 : vector<2x32xf32>
    %19 = vector.extract_strided_slice %6 {offsets = [0, 2], sizes = [2, 1], strides = [1, 1]} : vector<2x8xf32> to vector<2x1xf32>
    %20 = vector.broadcast %19 : vector<2x1xf32> to vector<2x32xf32>
    %21 = vector.broadcast %2 : vector<1x32xf32> to vector<2x32xf32>
    %22 = arith.mulf %20, %21 : vector<2x32xf32>
    %23 = vector.broadcast %3 : vector<1x32xf32> to vector<2x32xf32>
    %24 = arith.addf %22, %23 : vector<2x32xf32>
    %25 = vector.extract_strided_slice %6 {offsets = [0, 3], sizes = [2, 1], strides = [1, 1]} : vector<2x8xf32> to vector<2x1xf32>
    %26 = vector.broadcast %25 : vector<2x1xf32> to vector<2x32xf32>
    %27 = vector.broadcast %2 : vector<1x32xf32> to vector<2x32xf32>
    %28 = arith.mulf %26, %27 : vector<2x32xf32>
    %29 = vector.broadcast %3 : vector<1x32xf32> to vector<2x32xf32>
    %30 = arith.addf %28, %29 : vector<2x32xf32>
    %31 = vector.extract_strided_slice %6 {offsets = [0, 4], sizes = [2, 1], strides = [1, 1]} : vector<2x8xf32> to vector<2x1xf32>
    %32 = vector.broadcast %31 : vector<2x1xf32> to vector<2x32xf32>
    %33 = vector.broadcast %2 : vector<1x32xf32> to vector<2x32xf32>
    %34 = arith.mulf %32, %33 : vector<2x32xf32>
    %35 = vector.broadcast %3 : vector<1x32xf32> to vector<2x32xf32>
    %36 = arith.addf %34, %35 : vector<2x32xf32>
    %37 = vector.extract_strided_slice %6 {offsets = [0, 5], sizes = [2, 1], strides = [1, 1]} : vector<2x8xf32> to vector<2x1xf32>
    %38 = vector.broadcast %37 : vector<2x1xf32> to vector<2x32xf32>
    %39 = vector.broadcast %2 : vector<1x32xf32> to vector<2x32xf32>
    %40 = arith.mulf %38, %39 : vector<2x32xf32>
    %41 = vector.broadcast %3 : vector<1x32xf32> to vector<2x32xf32>
    %42 = arith.addf %40, %41 : vector<2x32xf32>
    %43 = vector.extract_strided_slice %6 {offsets = [0, 6], sizes = [2, 1], strides = [1, 1]} : vector<2x8xf32> to vector<2x1xf32>
    %44 = vector.broadcast %43 : vector<2x1xf32> to vector<2x32xf32>
    %45 = vector.broadcast %2 : vector<1x32xf32> to vector<2x32xf32>
    %46 = arith.mulf %44, %45 : vector<2x32xf32>
    %47 = vector.broadcast %3 : vector<1x32xf32> to vector<2x32xf32>
    %48 = arith.addf %46, %47 : vector<2x32xf32>
    %49 = vector.extract_strided_slice %6 {offsets = [0, 7], sizes = [2, 1], strides = [1, 1]} : vector<2x8xf32> to vector<2x1xf32>
    %50 = vector.broadcast %49 : vector<2x1xf32> to vector<2x32xf32>
    %51 = vector.broadcast %2 : vector<1x32xf32> to vector<2x32xf32>
    %52 = arith.mulf %50, %51 : vector<2x32xf32>
    %53 = vector.broadcast %3 : vector<1x32xf32> to vector<2x32xf32>
    %54 = arith.addf %52, %53 : vector<2x32xf32>
    %cst = arith.constant 0.000000e+00 : f32
    %55 = vector.broadcast %cst : f32 to vector<2x32xf32>
    %56 = arith.truncf %55 : vector<2x32xf32> to vector<2x32xbf16>
    %cst_7 = arith.constant dense<0.000000e+00> : vector<2x32xf32>
    %57 = tpu.matmul %56, %1, %cst_7 {dimension_numbers = #tpu.dot_dimension_numbers<[1], [0], [0], [1], [0, 0, 1, 1], [], []>} : vector<2x32xbf16>, vector<32x32xbf16>, vector<2x32xf32> -> vector<2x32xf32>
    %58 = arith.addf %12, %57 : vector<2x32xf32>
    %59 = math.tanh %58 : vector<2x32xf32>
    %60 = arith.truncf %59 : vector<2x32xf32> to vector<2x32xbf16>
    %cst_8 = arith.constant dense<0.000000e+00> : vector<2x32xf32>
    %61 = tpu.matmul %60, %1, %cst_8 {dimension_numbers = #tpu.dot_dimension_numbers<[1], [0], [0], [1], [0, 0, 1, 1], [], []>} : vector<2x32xbf16>, vector<32x32xbf16>, vector<2x32xf32> -> vector<2x32xf32>
    %62 = arith.addf %18, %61 : vector<2x32xf32>
    %63 = math.tanh %62 : vector<2x32xf32>
    %64 = arith.truncf %63 : vector<2x32xf32> to vector<2x32xbf16>
    %cst_9 = arith.constant dense<0.000000e+00> : vector<2x32xf32>
    %65 = tpu.matmul %64, %1, %cst_9 {dimension_numbers = #tpu.dot_dimension_numbers<[1], [0], [0], [1], [0, 0, 1, 1], [], []>} : vector<2x32xbf16>, vector<32x32xbf16>, vector<2x32xf32> -> vector<2x32xf32>
    %66 = arith.addf %24, %65 : vector<2x32xf32>
    %67 = math.tanh %66 : vector<2x32xf32>
    %68 = arith.truncf %67 : vector<2x32xf32> to vector<2x32xbf16>
    %cst_10 = arith.constant dense<0.000000e+00> : vector<2x32xf32>
    %69 = tpu.matmul %68, %1, %cst_10 {dimension_numbers = #tpu.dot_dimension_numbers<[1], [0], [0], [1], [0, 0, 1, 1], [], []>} : vector<2x32xbf16>, vector<32x32xbf16>, vector<2x32xf32> -> vector<2x32xf32>
    %70 = arith.addf %30, %69 : vector<2x32xf32>
    %71 = math.tanh %70 : vector<2x32xf32>
    %72 = arith.truncf %71 : vector<2x32xf32> to vector<2x32xbf16>
    %cst_11 = arith.constant dense<0.000000e+00> : vector<2x32xf32>
    %73 = tpu.matmul %72, %1, %cst_11 {dimension_numbers = #tpu.dot_dimension_numbers<[1], [0], [0], [1], [0, 0, 1, 1], [], []>} : vector<2x32xbf16>, vector<32x32xbf16>, vector<2x32xf32> -> vector<2x32xf32>
    %74 = arith.addf %36, %73 : vector<2x32xf32>
    %75 = math.tanh %74 : vector<2x32xf32>
    %76 = arith.truncf %75 : vector<2x32xf32> to vector<2x32xbf16>
    %cst_12 = arith.constant dense<0.000000e+00> : vector<2x32xf32>
    %77 = tpu.matmul %76, %1, %cst_12 {dimension_numbers = #tpu.dot_dimension_numbers<[1], [0], [0], [1], [0, 0, 1, 1], [], []>} : vector<2x32xbf16>, vector<32x32xbf16>, vector<2x32xf32> -> vector<2x32xf32>
    %78 = arith.addf %42, %77 : vector<2x32xf32>
    %79 = math.tanh %78 : vector<2x32xf32>
    %80 = arith.truncf %79 : vector<2x32xf32> to vector<2x32xbf16>
    %cst_13 = arith.constant dense<0.000000e+00> : vector<2x32xf32>
    %81 = tpu.matmul %80, %1, %cst_13 {dimension_numbers = #tpu.dot_dimension_numbers<[1], [0], [0], [1], [0, 0, 1, 1], [], []>} : vector<2x32xbf16>, vector<32x32xbf16>, vector<2x32xf32> -> vector<2x32xf32>
    %82 = arith.addf %48, %81 : vector<2x32xf32>
    %83 = math.tanh %82 : vector<2x32xf32>
    %84 = arith.truncf %83 : vector<2x32xf32> to vector<2x32xbf16>
    %cst_14 = arith.constant dense<0.000000e+00> : vector<2x32xf32>
    %85 = tpu.matmul %84, %1, %cst_14 {dimension_numbers = #tpu.dot_dimension_numbers<[1], [0], [0], [1], [0, 0, 1, 1], [], []>} : vector<2x32xbf16>, vector<32x32xbf16>, vector<2x32xf32> -> vector<2x32xf32>
    %86 = arith.addf %54, %85 : vector<2x32xf32>
    %87 = math.tanh %86 : vector<2x32xf32>
    %88 = vector.broadcast %4 : vector<1x32xf32> to vector<2x32xf32>
    %89 = arith.mulf %87, %88 : vector<2x32xf32>
    %cst_15 = arith.constant dense<0.000000e+00> : vector<2xf32>
    %90 = vector.multi_reduction <add>, %89, %cst_15 [1] : vector<2x32xf32> to vector<2xf32>
    %91 = vector.shape_cast %90 : vector<2xf32> to vector<2x1xf32>
    %92 = vector.broadcast %5 : vector<1x1xf32> to vector<2x1xf32>
    %93 = arith.addf %91, %92 : vector<2x1xf32>
    %c0_16 = arith.constant 0 : index
    %c0_17 = arith.constant 0 : index
    %94 = vector.load %arg2[%c0_16, %c0_17] : memref<2x1xf32, #tpu.memory_space<vmem>>, vector<2x1xf32>
    tpu.vector_store %arg2[%c0_16, %c0_17], %93 {strides = array<i32>} : memref<2x1xf32, #tpu.memory_space<vmem>>, vector<2x1xf32>,
    return
  }
}

</mosaic_0001>

<bundles_post_ra>
// kernel: tpu_custom_call.1
= control target key start
LH: loop header
LB: loop body
LE: loop exit
PB: predicated region body
PF: predicated region fallthrough
CT: control target
= control target key end

     0   :  { %v602_v0 = vmov 0.0   ;;  %vm603_vm0 = vmmov 0   ;;  %v604_v6 = vmov 0   ;;  %v605_v9 = vmov 1   ;;  %s746_s1 = inlined_call_operand.vmem [shape: f32[36,32], index: 1, kind: input, shape index: {}]   ;;  %s747_s0 = inlined_call_operand.vmem [shape: f32[2,8], index: 0, kind: input, shape index: {}]   ;;  %s748_s2 = inlined_call_operand.vmem [shape: f32[2,1], index: 2, kind: output, shape index: {}]  }
   0x1   :  { %503 = vmatprep.subr.bf16.mxu0 %v602_v0  ;;  %v12_v1 = vld [vmem:[%s746_s1] sm:$0xff]  ;;  %v13_v2 = vld [vmem:[%s746_s1 + $0x8] sm:$0xff]  ;;  %v14_v3 = vld [vmem:[%s746_s1 + $0x10] sm:$0xff]  ;;  %507 = vmatprep.mubr.msk.bf16.mxu0 %vm603_vm0, %v602_v0  ;;  %vm80_vm1 = vcmask 261120   ;;  %v606_v22 = vmov 2   ;;  %v607_v33 = vmov 3  }
   0x2   :  { %v639_v4 = vpack.c.bf16 %v13_v2, %v12_v1  ;;  %v15_v5 = vld [vmem:[%s746_s1 + $0x18] sm:$0xff]  ;;  %577 = vset.pattern.permute.xlu0 %v604_v6  ;;  %v647_v7 = vld [vmem:[%s747_s0] sm:$0x3]  ;;  %511 = vmatprep.subr.bf16.mxu1 %v602_v0  ;;  %v608_v44 = vmov 4   ;;  %v609_v55 = vmov 5   ;;  %vm453_vm2 = vcmask 254976  }
   0x3   :  { %25 = vperm.xlu0 %577, %v647_v7   ;;  %515 = vmatprep.mubr.msk.bf16.mxu1 %vm603_vm0, %v602_v0  ;;  %v654_v8 = vpack.c.bf16 %v15_v5, %v14_v3  ;;  %v673_v10 = vld [vmem:[%s746_s1 + $0x20] ss:$0 sm:$0xff]  ;;  %v679_v13 = vld [vmem:[%s746_s1 + $0x21] ss:$0 sm:$0xff]  ;;  %v610_v3 = vmov 6   ;;  %vm462_vm3 = vcmask 1024  }
   0x4   :  { %504 = vmatpush3.bf16.msra.mxu0 %v639_v4  ;;  %512 = vmatpush3.bf16.msra.mxu1 %v639_v4 }
   0x5   :  { %505 = vmatprep.subr.bf16.mxu0 %v602_v0  ;;  %513 = vmatprep.subr.bf16.mxu1 %v602_v0 }
   0x6   :  { %579 = vset.pattern.permute.xlu1 %v606_v22 }
   0x7   :  { %578 = vset.pattern.permute.xlu0 %v605_v9  ;;  %45 = vperm.xlu1 %579, %v647_v7  }
   0x8   :  { %506 = vmatpush3.bf16.msra.mxu0 %v654_v8  ;;  %514 = vmatpush3.bf16.msra.mxu1 %v654_v8 }
   0x9   :  { %519 = vmatprep.subr.bf16.mxu0 %v602_v0  ;;  %527 = vmatprep.subr.bf16.mxu1 %v602_v0 }
   0xa   :  { %39 = vperm.xlu0 %578, %v647_v7  }
   0xb   :  { %508 = vmatmul.mubr.bf16.vlgmr.msra.gmra.mrb[0].mxu0 %v604_v6  ;;  %580 = vset.pattern.permute.xlu1 %v607_v33 }
   0xc   :  { %520 = vmatpush3.bf16.msra.mxu0 %v639_v4  ;;  %523 = vmatprep.mubr.msk.bf16.mxu0 %vm603_vm0, %v602_v0 }
   0xd   :  { %521 = vmatprep.subr.bf16.mxu0 %v602_v0  ;;  %51 = vperm.xlu1 %580, %v647_v7  }
   0xe   :  { %582 = vset.pattern.permute.xlu0 %v609_v55 }
   0xf   :  { %63 = vperm.xlu0 %582, %v647_v7  }
  0x10   :  { %522 = vmatpush3.bf16.msra.mxu0 %v654_v8 }
  0x11   :  { %535 = vmatprep.subr.bf16.mxu0 %v602_v0  ;;  %581 = vset.pattern.permute.xlu1 %v608_v44 }
  0x12   :  { %57 = vperm.xlu1 %581, %v647_v7  }
  0x16   :  { %583 = vset.pattern.permute.xlu1 %v610_v3 }
  0x17   :  { %69 = vperm.xlu1 %583, %v647_v7  }
  0x82   :  { %v26_v11 = vpop.permute.xlu0 %25 }
  0x83   :  { %v32_v12 = vmul.f32 %v673_v10, %v26_v11 }
  0x85   :  { %v37_v14 = vadd.f32 %v679_v13, %v32_v12 }
  0x86   :  { %v46_v34 = vpop.permute.xlu1 %45 }
  0x87   :  { %v48_v35 = vmul.f32 %v673_v10, %v46_v34  ;;  %v477_v34 = vld [vmem:[%s746_s1 + $0x22] ss:$0 sm:$0xff] }
  0x89   :  { %v40_v23 = vpop.permute.xlu0 %39  ;;  %v49_v36 = vadd.f32 %v679_v13, %v48_v35 }
  0x8a   :  { %v42_v24 = vmul.f32 %v673_v10, %v40_v23 }
  0x8c   :  { %v43_v25 = vadd.f32 %v679_v13, %v42_v24  ;;  %v52_v45 = vpop.permute.xlu1 %51 }
  0x8d   :  { %v54_v46 = vmul.f32 %v673_v10, %v52_v45 }
  0x8e   :  { %v64_v5 = vpop.permute.xlu0 %63 }
  0x8f   :  { %v55_v47 = vadd.f32 %v679_v13, %v54_v46  ;;  %v66_v6 = vmul.f32 %v673_v10, %v64_v5 }
  0x91   :  { %v58_v56 = vpop.permute.xlu1 %57  ;;  %v67_v9 = vadd.f32 %v679_v13, %v66_v6 }
  0x92   :  { %v60_v57 = vmul.f32 %v673_v10, %v58_v56 }
  0x94   :  { %v61_v58 = vadd.f32 %v679_v13, %v60_v57 }
  0xde   :  { %v118_v15 = vpop.f32.mrb[0].mxu0 }
  0xdf   :  { %v124_v16 = vadd.f32 %v118_v15, %v37_v14  ;;  %v509_v17 = vpop.f32.mrb[1].mxu0 }
  0xe0   :  { %v121_v18 = vpop.f32.mrb[2].mxu0 }
  0xe1   :  { %586 = vtanh.f32 %v124_v16  ;;  %v510_v19 = vpop.f32.mrb[3].mxu0 }
  0xeb   :  { %v587_v20 = vpop.eup %586 }
  0xec   :  { %v126_v21 = vpack.c.bf16 %v587_v20, %v587_v20 }
  0xee   :  { %516 = vmatmul.mubr.msk.bf16.vlgmr.msra.gmra.mrb[0].mxu1 %vm80_vm1, %v126_v21 }
  0xef   :  { %528 = vmatpush3.bf16.msra.mxu1 %v639_v4  ;;  %531 = vmatprep.mubr.msk.bf16.mxu1 %vm603_vm0, %v602_v0 }
  0xf0   :  { %529 = vmatprep.subr.bf16.mxu1 %v602_v0 }
  0xf3   :  { %530 = vmatpush3.bf16.msra.mxu1 %v654_v8 }
  0xf4   :  { %543 = vmatprep.subr.bf16.mxu1 %v602_v0 }
 0x1c1   :  { %v164_v26 = vpop.f32.mrb[0].mxu1 }
 0x1c2   :  { %v170_v27 = vadd.f32 %v164_v26, %v43_v25  ;;  %v517_v28 = vpop.f32.mrb[1].mxu1 }
 0x1c3   :  { %v167_v29 = vpop.f32.mrb[2].mxu1 }
 0x1c4   :  { %588 = vtanh.f32 %v170_v27  ;;  %v518_v30 = vpop.f32.mrb[3].mxu1 }
 0x1ce   :  { %v589_v31 = vpop.eup %588 }
 0x1cf   :  { %v172_v32 = vpack.c.bf16 %v589_v31, %v589_v31 }
 0x1d1   :  { %524 = vmatmul.mubr.msk.bf16.vlgmr.msra.gmra.mrb[4].mxu0 %vm80_vm1, %v172_v32 }
 0x1d2   :  { %536 = vmatpush3.bf16.msra.mxu0 %v639_v4  ;;  %539 = vmatprep.mubr.msk.bf16.mxu0 %vm603_vm0, %v602_v0 }
 0x1d3   :  { %537 = vmatprep.subr.bf16.mxu0 %v602_v0 }
 0x1d6   :  { %538 = vmatpush3.bf16.msra.mxu0 %v654_v8 }
 0x1d7   :  { %551 = vmatprep.subr.bf16.mxu0 %v602_v0 }
 0x2a4   :  { %v210_v37 = vpop.f32.mrb[4].mxu0 }
 0x2a5   :  { %v216_v38 = vadd.f32 %v210_v37, %v49_v36  ;;  %v525_v39 = vpop.f32.mrb[5].mxu0 }
 0x2a6   :  { %v213_v40 = vpop.f32.mrb[6].mxu0 }
 0x2a7   :  { %590 = vtanh.f32 %v216_v38  ;;  %v526_v41 = vpop.f32.mrb[7].mxu0 }
 0x2b1   :  { %v591_v42 = vpop.eup %590 }
 0x2b2   :  { %v218_v43 = vpack.c.bf16 %v591_v42, %v591_v42 }
 0x2b4   :  { %532 = vmatmul.mubr.msk.bf16.vlgmr.msra.gmra.mrb[4].mxu1 %vm80_vm1, %v218_v43 }
 0x2b5   :  { %544 = vmatpush3.bf16.msra.mxu1 %v639_v4  ;;  %547 = vmatprep.mubr.msk.bf16.mxu1 %vm603_vm0, %v602_v0 }
 0x2b6   :  { %545 = vmatprep.subr.bf16.mxu1 %v602_v0 }
 0x2b9   :  { %546 = vmatpush3.bf16.msra.mxu1 %v654_v8 }
 0x2ba   :  { %559 = vmatprep.subr.bf16.mxu1 %v602_v0 }
 0x387   :  { %v256_v48 = vpop.f32.mrb[4].mxu1 }
 0x388   :  { %v262_v49 = vadd.f32 %v256_v48, %v55_v47  ;;  %v533_v50 = vpop.f32.mrb[5].mxu1 }
 0x389   :  { %v259_v51 = vpop.f32.mrb[6].mxu1 }
 0x38a   :  { %592 = vtanh.f32 %v262_v49  ;;  %v534_v52 = vpop.f32.mrb[7].mxu1 }
 0x394   :  { %v593_v53 = vpop.eup %592 }
 0x395   :  { %v264_v54 = vpack.c.bf16 %v593_v53, %v593_v53 }
 0x397   :  { %540 = vmatmul.mubr.msk.bf16.vlgmr.msra.gmra.mrb[8].mxu0 %vm80_vm1, %v264_v54 }
 0x398   :  { %552 = vmatpush3.bf16.msra.mxu0 %v639_v4  ;;  %555 = vmatprep.mubr.msk.bf16.mxu0 %vm603_vm0, %v602_v0 }
 0x399   :  { %553 = vmatprep.subr.bf16.mxu0 %v602_v0 }
 0x39c   :  { %554 = vmatpush3.bf16.msra.mxu0 %v654_v8 }
 0x46a   :  { %v302_v59 = vpop.f32.mrb[8].mxu0 }
 0x46b   :  { %v308_v60 = vadd.f32 %v302_v59, %v61_v58  ;;  %v541_v61 = vpop.f32.mrb[9].mxu0 }
 0x46c   :  { %v305_v62 = vpop.f32.mrb[10].mxu0 }
 0x46d   :  { %594 = vtanh.f32 %v308_v60  ;;  %v542_v63 = vpop.f32.mrb[11].mxu0 }
 0x477   :  { %v595_v1 = vpop.eup %594 }
 0x478   :  { %v310_v2 = vpack.c.bf16 %v595_v1, %v595_v1 }
 0x47a   :  { %548 = vmatmul.mubr.msk.bf16.vlgmr.msra.gmra.mrb[8].mxu1 %vm80_vm1, %v310_v2 }
 0x47b   :  { %560 = vmatpush3.bf16.msra.mxu1 %v639_v4  ;;  %563 = vmatprep.mubr.msk.bf16.mxu1 %vm603_vm0, %v602_v0 }
 0x47c   :  { %561 = vmatprep.subr.bf16.mxu1 %v602_v0  ;;  %v611_v0 = vmov 7  }
 0x47d   :  { %584 = vset.pattern.permute.xlu1 %v611_v0  ;;  %585 = vset.pattern.permute.xlu0 %v611_v0 }
 0x47e   :  { %75 = vperm.xlu1 %584, %v647_v7  }
 0x47f   :  { %562 = vmatpush3.bf16.msra.mxu1 %v654_v8  ;;  %v70_v8 = vpop.permute.xlu1 %69 }
 0x480   :  { %v72_v18 = vmul.f32 %v673_v10, %v70_v8 }
 0x482   :  { %v73_v19 = vadd.f32 %v679_v13, %v72_v18 }
 0x4fd   :  { %v76_v27 = vpop.permute.xlu1 %75 }
 0x4fe   :  { %v78_v28 = vmul.f32 %v673_v10, %v76_v27  ;;  %v478_v10 = vld [vmem:[%s746_s1 + $0x23] ss:$0 sm:$0xff] }
 0x500   :  { %v79_v7 = vadd.f32 %v679_v13, %v78_v28 }
 0x54d   :  { %v348_v11 = vpop.f32.mrb[8].mxu1 }
 0x54e   :  { %v354_v12 = vadd.f32 %v348_v11, %v67_v9  ;;  %v549_v14 = vpop.f32.mrb[9].mxu1 }
 0x54f   :  { %v351_v4 = vpop.f32.mrb[10].mxu1 }
 0x550   :  { %596 = vtanh.f32 %v354_v12  ;;  %v550_v15 = vpop.f32.mrb[11].mxu1 }
 0x55a   :  { %v597_v16 = vpop.eup %596 }
 0x55b   :  { %v356_v17 = vpack.c.bf16 %v597_v16, %v597_v16 }
 0x55d   :  { %556 = vmatmul.mubr.msk.bf16.vlgmr.msra.gmra.mrb[12].mxu0 %vm80_vm1, %v356_v17 }
 0x630   :  { %v394_v20 = vpop.f32.mrb[12].mxu0 }
 0x631   :  { %v400_v21 = vadd.f32 %v394_v20, %v73_v19  ;;  %v557_v22 = vpop.f32.mrb[13].mxu0 }
 0x632   :  { %v397_v23 = vpop.f32.mrb[14].mxu0 }
 0x633   :  { %598 = vtanh.f32 %v400_v21  ;;  %v558_v24 = vpop.f32.mrb[15].mxu0 }
 0x63d   :  { %v599_v25 = vpop.eup %598 }
 0x63e   :  { %v402_v26 = vpack.c.bf16 %v599_v25, %v599_v25 }
 0x640   :  { %564 = vmatmul.mubr.msk.bf16.vlgmr.msra.gmra.mrb[12].mxu1 %vm80_vm1, %v402_v26 }
 0x713   :  { %v440_v29 = vpop.f32.mrb[12].mxu1 }
 0x714   :  { %v446_v30 = vadd.f32 %v440_v29, %v79_v7  ;;  %v565_v31 = vpop.f32.mrb[13].mxu1 }
 0x715   :  { %v443_v32 = vpop.f32.mrb[14].mxu1 }
 0x716   :  { %600 = vtanh.f32 %v446_v30  ;;  %v566_v33 = vpop.f32.mrb[15].mxu1 }
 0x720   :  { %v601_v35 = vpop.eup %600 }
 0x721   :  { %v452_v36 = vmul.f32 %v601_v35, %v477_v34 }
 0x723   :  { %v454_v37 = vsel %vm453_vm2, %v452_v36, 0.0 }
 0x724   :  { %455 = vadd.xlane.f32.xlu0 %v454_v37 }
 0x7b1   :  { %v456_v13 = vpop.xlane.xlu0 %455 }
 0x7b2   :  { %v461_v38 = vadd.f32 %v478_v10, %v456_v13 }
 0x7b4   :  { %463 = vst.msk [vmem:[%s748_s2] sm:$0x3] %vm462_vm3, %v461_v38 }

</bundles_post_ra>
